<compile_context>
chip_gen: v5e
topology: v5e:2x2
jax: 0.10.0
libtpu: 0.0.40
codegen_flags: <defaults>
</compile_context>

<pallas_src>
import functools
import math

import numpy as np
import jax
import jax.numpy as jnp
from jax.experimental import pallas as pl
from jax.experimental.pallas import tpu as pltpu

MEAN = 0.1307
SIGMA = 0.3081


# ----------------------------- Pallas kernel --------------------------------

def _fused_chain_kernel(*refs, relu_flags):
    """refs = (x_ref, w1_ref, b1_ref, ..., wL_ref, bL_ref, o_ref).

    Runs the whole matmul+bias(+ReLU) chain with activations kept as values
    (vregs / VMEM); only the final result is stored to the HBM-backed output.
    """
    x_ref = refs[0]
    o_ref = refs[-1]
    h = x_ref[...]
    for li, relu in enumerate(relu_flags):
        w_ref = refs[1 + 2 * li]
        b_ref = refs[2 + 2 * li]
        h = jnp.dot(h, w_ref[...], preferred_element_type=jnp.float32)
        h = h + b_ref[...]                     # (1, N) broadcasts over rows
        if relu:
            h = jnp.maximum(h, 0.0)
    o_ref[...] = h.astype(o_ref.dtype)


def fused_forward(x_flat, mats, *, max_block_rows=256):
    """Run the whole (conv+fc) chain as ONE pallas_call.

    x_flat: (N, K0) float32, NCHW-flattened raw input (normalization is
            already folded into mats[0]).
    mats:   list of (W (K, N), b (1, N), relu) produced by prep_params.
    """
    n_rows, k0 = x_flat.shape
    tm = n_rows if n_rows <= max_block_rows else max_block_rows
    grid = (pl.cdiv(n_rows, tm),)

    relu_flags = tuple(bool(m[2]) for m in mats)
    args = [x_flat]
    in_specs = [pl.BlockSpec((tm, k0), lambda i: (i, 0))]
    for w, b, _ in mats:
        args.append(w)
        args.append(b)
        in_specs.append(pl.BlockSpec(w.shape, lambda i: (0, 0)))
        in_specs.append(pl.BlockSpec(b.shape, lambda i: (0, 0)))
    out_dim = mats[-1][0].shape[1]

    return pl.pallas_call(
        functools.partial(_fused_chain_kernel, relu_flags=relu_flags),
        out_shape=jax.ShapeDtypeStruct((n_rows, out_dim), jnp.float32),
        grid=grid,
        in_specs=in_specs,
        out_specs=pl.BlockSpec((tm, out_dim), lambda i: (i, 0)),
        compiler_params=pltpu.CompilerParams(
            dimension_semantics=("parallel",)),
    )(*args)


# --------------------- one-time parameter preparation ------------------------

def _conv_to_dense(w, b, stride, padding, in_h, in_w):
    """Lower a Conv2d to y_flat = x_flat @ A + b_dense (NCHW flatten order).

    w: (Cout, Cin, kh, kw), b: (Cout,). Returns (A, b_dense, OH, OW) with
    A shape (Cin*H*W, Cout*OH*OW). One-time numpy construction at init.
    """
    cout, cin, kh, kw = w.shape
    oh_n = (in_h + 2 * padding - kh) // stride + 1
    ow_n = (in_w + 2 * padding - kw) // stride + 1
    wn = np.asarray(w, dtype=np.float64)
    A = np.zeros((cin * in_h * in_w, cout * oh_n * ow_n), dtype=np.float64)
    for co in range(cout):
        for ci in range(cin):
            for i in range(kh):
                for j in range(kw):
                    wv = wn[co, ci, i, j]
                    for oh in range(oh_n):
                        h = oh * stride + i - padding
                        if h < 0 or h >= in_h:
                            continue
                        for ow in range(ow_n):
                            wp = ow * stride + j - padding
                            if wp < 0 or wp >= in_w:
                                continue
                            A[ci * in_h * in_w + h * in_w + wp,
                              co * oh_n * ow_n + oh * ow_n + ow] = wv
    b_dense = np.repeat(np.asarray(b, dtype=np.float64), oh_n * ow_n)
    return A, b_dense, oh_n, ow_n


def prep_params(params, input_size):
    """Fold normalization into the first layer, lower convs to dense matrices,
    pre-transpose FC weights, pre-reshape biases. Returns [(W, b(1,N), relu)]."""
    mats = []
    img_h = img_w = input_size
    first = True
    for layer in params:
        if layer[0] == "conv":
            _, w, b, s, p = layer
            A, bd, img_h, img_w = _conv_to_dense(
                np.asarray(w), np.asarray(b), s, p, img_h, img_w)
            if first:
                # (x - MEAN)/SIGMA @ A + b  ==  x @ (A/SIGMA) + (b - MEAN/SIGMA * colsum(A))
                bd = bd - (MEAN / SIGMA) * A.sum(axis=0)
                A = A / SIGMA
                first = False
            mats.append((jnp.asarray(A, jnp.float32),
                         jnp.asarray(bd, jnp.float32).reshape(1, -1),
                         True))
        else:
            _, w, b, relu = layer
            wt = np.asarray(w, dtype=np.float64).T
            bd = np.asarray(b, dtype=np.float64)
            if first:  # no conv layers: fold normalization into the first FC
                bd = bd - (MEAN / SIGMA) * wt.sum(axis=0)
                wt = wt / SIGMA
                first = False
            mats.append((jnp.asarray(wt, jnp.float32),
                         jnp.asarray(bd, jnp.float32).reshape(1, -1),
                         bool(relu)))
    return mats


# ------------------------------- model glue ----------------------------------

def init_params(key, input_size, conv_layers, fc_layers):
    """Deterministic PyTorch-default-style (uniform +-1/sqrt(fan_in)) init."""
    params = []
    prev_c, img_dim = 1, input_size
    for (n_ch, k, s, p) in conv_layers:
        key, k1, k2 = jax.random.split(key, 3)
        bound = 1.0 / math.sqrt(prev_c * k * k)
        w = jax.random.uniform(k1, (n_ch, prev_c, k, k), jnp.float32, -bound, bound)
        b = jax.random.uniform(k2, (n_ch,), jnp.float32, -bound, bound)
        params.append(("conv", w, b, s, p))
        prev_c, img_dim = n_ch, img_dim // s
    prev_fc = prev_c * img_dim * img_dim
    for i, fc in enumerate(fc_layers):
        key, k1, k2 = jax.random.split(key, 3)
        bound = 1.0 / math.sqrt(prev_fc)
        w = jax.random.uniform(k1, (fc, prev_fc), jnp.float32, -bound, bound)
        b = jax.random.uniform(k2, (fc,), jnp.float32, -bound, bound)
        params.append(("fc", w, b, i + 1 < len(fc_layers)))
        prev_fc = fc
    return params


def conv_forward(x, mats):
    """Fused Pallas forward pass. x: (N, 1, H, W) NCHW float32 -> (N, n_class)."""
    x_flat = x.reshape(x.shape[0], -1)   # metadata-only NCHW flatten
    return fused_forward(x_flat, mats)


def reference_forward(x, params):
    """Pure-JAX reference matching PyTorch semantics, for validation."""
    x = (x - MEAN) / SIGMA
    for layer in params:
        if layer[0] == "conv":
            _, w, b, s, p = layer
            y = jax.lax.conv_general_dilated(
                x, w, (s, s), [(p, p), (p, p)],
                dimension_numbers=("NCHW", "OIHW", "NCHW"))
            x = jnp.maximum(y + b.reshape(1, -1, 1, 1), 0.0)
        else:
            _, w, b, relu = layer
            if x.ndim > 2:
                x = x.reshape(x.shape[0], -1)
            y = x @ w.T + b
            x = jnp.maximum(y, 0.0) if relu else y
    return x


if __name__ == "__main__":
    key = jax.random.PRNGKey(0)
    k_param, k_x = jax.random.split(key)

    # Small Conv config: input 16x16 grayscale, two conv layers, two FC layers.
    input_size = 16
    conv_layers = [(4, 3, 2, 1), (8, 3, 2, 1)]   # (channels, kernel, stride, padding)
    fc_layers = [32, 10]
    batch = 2

    params = init_params(k_param, input_size, conv_layers, fc_layers)
    mats = prep_params(params, input_size)       # one-time weight preparation
    x = jax.random.uniform(k_x, (batch, 1, input_size, input_size), jnp.float32)

    out = conv_forward(x, mats)
    out = jax.block_until_ready(out)

    ref = reference_forward(x, params)
    assert out.shape == (batch, fc_layers[-1]), out.shape
    assert jnp.allclose(out, ref, atol=1e-4, rtol=1e-4), "mismatch vs reference"

    print("KERNEL_OK")
</pallas_src>

<mosaic_0001>
module attributes {stable_mosaic.version = 11 : i64} {
  func.func @_fused_chain_kernel(%arg0: i32, %arg1: memref<2x256xf32, #tpu.memory_space<vmem>>, %arg2: memref<256x256xf32, #tpu.memory_space<vmem>>, %arg3: memref<1x256xf32, #tpu.memory_space<vmem>>, %arg4: memref<256x128xf32, #tpu.memory_space<vmem>>, %arg5: memref<1x128xf32, #tpu.memory_space<vmem>>, %arg6: memref<128x32xf32, #tpu.memory_space<vmem>>, %arg7: memref<1x32xf32, #tpu.memory_space<vmem>>, %arg8: memref<32x10xf32, #tpu.memory_space<vmem>>, %arg9: memref<1x10xf32, #tpu.memory_space<vmem>>, %arg10: memref<2x10xf32, #tpu.memory_space<vmem>>) attributes {dimension_semantics = [#tpu.dimension_semantics<parallel>], iteration_bounds = array<i64: 1>, scalar_prefetch = 0 : i64, scratch_operands = 0 : i64, tpu.core_type = #tpu.core_type<tc>, window_params = [{transform_indices = @transform_0, window_bounds = array<i64: 2, 256>}, {pipeline_mode = #tpu.pipeline_mode<synchronous>, transform_indices = @transform_1, window_bounds = array<i64: 256, 256>}, {pipeline_mode = #tpu.pipeline_mode<synchronous>, transform_indices = @transform_2, window_bounds = array<i64: 1, 256>}, {pipeline_mode = #tpu.pipeline_mode<synchronous>, transform_indices = @transform_3, window_bounds = array<i64: 256, 128>}, {pipeline_mode = #tpu.pipeline_mode<synchronous>, transform_indices = @transform_4, window_bounds = array<i64: 1, 128>}, {pipeline_mode = #tpu.pipeline_mode<synchronous>, transform_indices = @transform_5, window_bounds = array<i64: 128, 32>}, {pipeline_mode = #tpu.pipeline_mode<synchronous>, transform_indices = @transform_6, window_bounds = array<i64: 1, 32>}, {pipeline_mode = #tpu.pipeline_mode<synchronous>, transform_indices = @transform_7, window_bounds = array<i64: 32, 10>}, {pipeline_mode = #tpu.pipeline_mode<synchronous>, transform_indices = @transform_8, window_bounds = array<i64: 1, 10>}, {transform_indices = @transform_9, window_bounds = array<i64: 2, 10>}]} {
    %c0 = arith.constant 0 : index
    %c0_0 = arith.constant 0 : index
    %0 = vector.load %arg1[%c0, %c0_0] : memref<2x256xf32, #tpu.memory_space<vmem>>, vector<2x256xf32>
    %c0_1 = arith.constant 0 : index
    %c0_2 = arith.constant 0 : index
    %1 = vector.load %arg2[%c0_1, %c0_2] : memref<256x256xf32, #tpu.memory_space<vmem>>, vector<256x256xf32>
    %cst = arith.constant dense<0.000000e+00> : vector<2x256xf32>
    %2 = tpu.matmul %0, %1, %cst {dimension_numbers = #tpu.dot_dimension_numbers<[1], [0], [0], [1], [0, 0, 1, 1], [], []>} : vector<2x256xf32>, vector<256x256xf32>, vector<2x256xf32> -> vector<2x256xf32>
    %c0_3 = arith.constant 0 : index
    %c0_4 = arith.constant 0 : index
    %3 = vector.load %arg3[%c0_3, %c0_4] : memref<1x256xf32, #tpu.memory_space<vmem>>, vector<1x256xf32>
    %4 = vector.broadcast %3 : vector<1x256xf32> to vector<2x256xf32>
    %5 = arith.addf %2, %4 : vector<2x256xf32>
    %cst_5 = arith.constant 0.000000e+00 : f32
    %6 = vector.broadcast %cst_5 : f32 to vector<2x256xf32>
    %7 = arith.maximumf %5, %6 : vector<2x256xf32>
    %c0_6 = arith.constant 0 : index
    %c0_7 = arith.constant 0 : index
    %8 = vector.load %arg4[%c0_6, %c0_7] : memref<256x128xf32, #tpu.memory_space<vmem>>, vector<256x128xf32>
    %cst_8 = arith.constant dense<0.000000e+00> : vector<2x128xf32>
    %9 = tpu.matmul %7, %8, %cst_8 {dimension_numbers = #tpu.dot_dimension_numbers<[1], [0], [0], [1], [0, 0, 1, 1], [], []>} : vector<2x256xf32>, vector<256x128xf32>, vector<2x128xf32> -> vector<2x128xf32>
    %c0_9 = arith.constant 0 : index
    %c0_10 = arith.constant 0 : index
    %10 = vector.load %arg5[%c0_9, %c0_10] : memref<1x128xf32, #tpu.memory_space<vmem>>, vector<1x128xf32>
    %11 = vector.broadcast %10 : vector<1x128xf32> to vector<2x128xf32>
    %12 = arith.addf %9, %11 : vector<2x128xf32>
    %cst_11 = arith.constant 0.000000e+00 : f32
    %13 = vector.broadcast %cst_11 : f32 to vector<2x128xf32>
    %14 = arith.maximumf %12, %13 : vector<2x128xf32>
    %c0_12 = arith.constant 0 : index
    %c0_13 = arith.constant 0 : index
    %15 = vector.load %arg6[%c0_12, %c0_13] : memref<128x32xf32, #tpu.memory_space<vmem>>, vector<128x32xf32>
    %cst_14 = arith.constant dense<0.000000e+00> : vector<2x32xf32>
    %16 = tpu.matmul %14, %15, %cst_14 {dimension_numbers = #tpu.dot_dimension_numbers<[1], [0], [0], [1], [0, 0, 1, 1], [], []>} : vector<2x128xf32>, vector<128x32xf32>, vector<2x32xf32> -> vector<2x32xf32>
    %c0_15 = arith.constant 0 : index
    %c0_16 = arith.constant 0 : index
    %17 = vector.load %arg7[%c0_15, %c0_16] : memref<1x32xf32, #tpu.memory_space<vmem>>, vector<1x32xf32>
    %18 = vector.broadcast %17 : vector<1x32xf32> to vector<2x32xf32>
    %19 = arith.addf %16, %18 : vector<2x32xf32>
    %cst_17 = arith.constant 0.000000e+00 : f32
    %20 = vector.broadcast %cst_17 : f32 to vector<2x32xf32>
    %21 = arith.maximumf %19, %20 : vector<2x32xf32>
    %c0_18 = arith.constant 0 : index
    %c0_19 = arith.constant 0 : index
    %22 = vector.load %arg8[%c0_18, %c0_19] : memref<32x10xf32, #tpu.memory_space<vmem>>, vector<32x10xf32>
    %cst_20 = arith.constant dense<0.000000e+00> : vector<2x10xf32>
    %23 = tpu.matmul %21, %22, %cst_20 {dimension_numbers = #tpu.dot_dimension_numbers<[1], [0], [0], [1], [0, 0, 1, 1], [], []>} : vector<2x32xf32>, vector<32x10xf32>, vector<2x10xf32> -> vector<2x10xf32>
    %c0_21 = arith.constant 0 : index
    %c0_22 = arith.constant 0 : index
    %24 = vector.load %arg9[%c0_21, %c0_22] : memref<1x10xf32, #tpu.memory_space<vmem>>, vector<1x10xf32>
    %25 = vector.broadcast %24 : vector<1x10xf32> to vector<2x10xf32>
    %26 = arith.addf %23, %25 : vector<2x10xf32>
    %c0_23 = arith.constant 0 : index
    %c0_24 = arith.constant 0 : index
    %27 = vector.load %arg10[%c0_23, %c0_24] : memref<2x10xf32, #tpu.memory_space<vmem>>, vector<2x10xf32>
    tpu.vector_store %arg10[%c0_23, %c0_24], %26 {strides = array<i32>} : memref<2x10xf32, #tpu.memory_space<vmem>>, vector<2x10xf32>,
    return
  }
  func.func @transform_0(%arg0: i32) -> (i32, i32) {
    %c0_i32 = arith.constant 0 : i32
    %c0_i32_0 = arith.constant 0 : i32
    return %arg0, %c0_i32 : i32, i32
  }
  func.func @transform_1(%arg0: i32) -> (i32, i32) {
    %c0_i32 = arith.constant 0 : i32
    %c0_i32_0 = arith.constant 0 : i32
    %c0_i32_1 = arith.constant 0 : i32
    return %c0_i32, %c0_i32_0 : i32, i32
  }
  func.func @transform_2(%arg0: i32) -> (i32, i32) {
    %c0_i32 = arith.constant 0 : i32
    %c0_i32_0 = arith.constant 0 : i32
    %c0_i32_1 = arith.constant 0 : i32
    return %c0_i32, %c0_i32_0 : i32, i32
  }
  func.func @transform_3(%arg0: i32) -> (i32, i32) {
    %c0_i32 = arith.constant 0 : i32
    %c0_i32_0 = arith.constant 0 : i32
    %c0_i32_1 = arith.constant 0 : i32
    return %c0_i32, %c0_i32_0 : i32, i32
  }
  func.func @transform_4(%arg0: i32) -> (i32, i32) {
    %c0_i32 = arith.constant 0 : i32
    %c0_i32_0 = arith.constant 0 : i32
    %c0_i32_1 = arith.constant 0 : i32
    return %c0_i32, %c0_i32_0 : i32, i32
  }
  func.func @transform_5(%arg0: i32) -> (i32, i32) {
    %c0_i32 = arith.constant 0 : i32
    %c0_i32_0 = arith.constant 0 : i32
    %c0_i32_1 = arith.constant 0 : i32
    return %c0_i32, %c0_i32_0 : i32, i32
  }
  func.func @transform_6(%arg0: i32) -> (i32, i32) {
    %c0_i32 = arith.constant 0 : i32
    %c0_i32_0 = arith.constant 0 : i32
    %c0_i32_1 = arith.constant 0 : i32
    return %c0_i32, %c0_i32_0 : i32, i32
  }
  func.func @transform_7(%arg0: i32) -> (i32, i32) {
    %c0_i32 = arith.constant 0 : i32
    %c0_i32_0 = arith.constant 0 : i32
    %c0_i32_1 = arith.constant 0 : i32
    return %c0_i32, %c0_i32_0 : i32, i32
  }
  func.func @transform_8(%arg0: i32) -> (i32, i32) {
    %c0_i32 = arith.constant 0 : i32
    %c0_i32_0 = arith.constant 0 : i32
    %c0_i32_1 = arith.constant 0 : i32
    return %c0_i32, %c0_i32_0 : i32, i32
  }
  func.func @transform_9(%arg0: i32) -> (i32, i32) {
    %c0_i32 = arith.constant 0 : i32
    %c0_i32_0 = arith.constant 0 : i32
    return %arg0, %c0_i32 : i32, i32
  }
}

</mosaic_0001>

<bundles_post_ra>
// kernel: tpu_custom_call.1
= control target key start
LH: loop header
LB: loop body
LE: loop exit
PB: predicated region body
PF: predicated region fallthrough
CT: control target
= control target key end

     0   :  { %14 = vsyncpa [#allocation3], 0  ;;  %s624_s0 = inlined_call_operand.vmem [shape: f32[2,256], index: 0, kind: input, shape index: {}]   ;;  %s625_s1 = inlined_call_operand.hbm [shape: f32[256,256], index: 1, kind: input, shape index: {}]   ;;  %s626_s2 = inlined_call_operand.vmem [shape: f32[1,256], index: 2, kind: input, shape index: {}]   ;;  %s627_s3 = inlined_call_operand.hbm [shape: f32[256,128], index: 3, kind: input, shape index: {}]   ;;  %s628_s4 = inlined_call_operand.vmem [shape: f32[1,128], index: 4, kind: input, shape index: {}]   ;;  %s629_s5 = inlined_call_operand.vmem [shape: f32[128,32], index: 5, kind: input, shape index: {}]   ;;  %s630_s6 = inlined_call_operand.vmem [shape: f32[1,32], index: 6, kind: input, shape index: {}]   ;;  %s631_s7 = inlined_call_operand.vmem [shape: f32[32,10], index: 7, kind: input, shape index: {}]   ;;  %s632_s8 = inlined_call_operand.vmem [shape: f32[1,10], index: 8, kind: input, shape index: {}]   ;;  %s633_s9 = inlined_call_operand.hbm [shape: f32[2,10], index: 9, kind: output, shape index: {}]  }
   0x1   :  { %15 = vsyncpa [#allocation6], 0 }
   0x2   :  { %16 = vsyncpa [#allocation4], 0  ;;  %s23_s11 = sshll.u32 %s625_s1, 4  ;;  %s483_s12 = smov [#allocation2]   ;;  %s24_s11 = int_to_ptr.hbm [resolvable:$true] %s23_s11 }
   0x3   :  { %s25_s13 = sshll.u32 %s483_s12, 4  ;;  %s38_s16 = sshll.u32 %s627_s3, 4  ;;  %s26_s13 = int_to_ptr.vmem [resolvable:$true] %s25_s13  ;;  %s39_s16 = int_to_ptr.hbm [resolvable:$true] %s38_s16 }
   0x4   :  { %s484_s17 = smov 256   ;;  %s485_s18 = smov 16  }
   0x5   :  { %31 = dma.hbm_to_vmem [thread:$0]  %s24_s11, 8192, %s26_s13, [#allocation3], %s484_s17, %s484_s17, %s485_s18  }
   0x6   :  { %s486_s19 = smov [#allocation5]   ;;  %s487_s21 = smov 128  }
   0x7   :  { %s40_s20 = sshll.u32 %s486_s19, 4  ;;  %s488_s22 = smov 8   ;;  %s41_s20 = int_to_ptr.vmem [resolvable:$true] %s40_s20 }
   0x8   :  { %46 = dma.hbm_to_vmem [thread:$0]  %s39_s16, 4096, %s41_s20, [#allocation6], %s487_s21, %s487_s21, %s488_s22  }
   0x9   :  { %477 = dma.done.wait [#allocation3], 8192  }
   0xa   :  { %478 = vsyncadd [#allocation3], 4294959104 }
   0xb   :  { %479 = dma.done.wait [#allocation6], 4096  }
   0xc   :  { %480 = vsyncadd [#allocation6], 4294963200  ;;  %v97_v0 = vld [vmem:[#allocation2 + $0xf8] sm:$0xff]  ;;  %v95_v1 = vld [vmem:[#allocation2 + $0xe8] sm:$0xff]  ;;  %vm350_vm0 = vcmask 261120   ;;  %s489_s22 = smov [#allocation7]  }
   0xd   :  { %v129_v2 = vld [vmem:[#allocation2 + $0x1f8] sm:$0xff]  ;;  %182 = vmatpush.msra.mxu2 %v97_v0  ;;  %v96_v3 = vld [vmem:[#allocation2 + $0xf0] sm:$0xff]  ;;  %v127_v4 = vld [vmem:[#allocation2 + $0x1e8] sm:$0xff]  ;;  %s381_s1 = sshll.u32 %s489_s22, 4  ;;  %vm374_vm1 = vcmask 74752   ;;  %s382_s1 = int_to_ptr.vmem [resolvable:$true] %s381_s1 }
   0xe   :  { %202 = vmatpush.msra.mxu3 %v129_v2  ;;  %142 = vmatpush.msra.mxu0 %v96_v3  ;;  %v93_v5 = vld [vmem:[#allocation2 + $0xd8] sm:$0xff]  ;;  %v94_v6 = vld [vmem:[#allocation2 + $0xe0] sm:$0xff]  ;;  %v128_v7 = vld [vmem:[#allocation2 + $0x1f0] sm:$0xff] }
   0xf   :  { %183 = vmatpush.msra.mxu2 %v95_v1  ;;  %v125_v8 = vld [vmem:[#allocation2 + $0x1d8] sm:$0xff]  ;;  %v92_v9 = vld [vmem:[#allocation2 + $0xd0] sm:$0xff]  ;;  %v126_v10 = vld [vmem:[#allocation2 + $0x1e0] sm:$0xff]  ;;  %162 = vmatpush.msra.mxu1 %v128_v7 }
  0x10   :  { %203 = vmatpush.msra.mxu3 %v127_v4  ;;  %143 = vmatpush.msra.mxu0 %v94_v6  ;;  %v91_v11 = vld [vmem:[#allocation2 + $0xc8] sm:$0xff]  ;;  %v90_v13 = vld [vmem:[#allocation2 + $0xc0] sm:$0xff]  ;;  %v124_v14 = vld [vmem:[#allocation2 + $0x1d0] sm:$0xff] }
  0x11   :  { %v123_v12 = vld [vmem:[#allocation2 + $0x1c8] sm:$0xff]  ;;  %184 = vmatpush.msra.mxu2 %v93_v5  ;;  %163 = vmatpush.msra.mxu1 %v126_v10  ;;  %v89_v15 = vld [vmem:[#allocation2 + $0xb8] sm:$0xff]  ;;  %v88_v17 = vld [vmem:[#allocation2 + $0xb0] sm:$0xff] }
  0x12   :  { %204 = vmatpush.msra.mxu3 %v125_v8  ;;  %144 = vmatpush.msra.mxu0 %v92_v9  ;;  %v121_v16 = vld [vmem:[#allocation2 + $0x1b8] sm:$0xff]  ;;  %v122_v18 = vld [vmem:[#allocation2 + $0x1c0] sm:$0xff]  ;;  %v87_v19 = vld [vmem:[#allocation2 + $0xa8] sm:$0xff] }
  0x13   :  { %185 = vmatpush.msra.mxu2 %v91_v11  ;;  %164 = vmatpush.msra.mxu1 %v124_v14  ;;  %v119_v20 = vld [vmem:[#allocation2 + $0x1a8] sm:$0xff]  ;;  %v86_v21 = vld [vmem:[#allocation2 + $0xa0] sm:$0xff]  ;;  %v120_v22 = vld [vmem:[#allocation2 + $0x1b0] sm:$0xff] }
  0x14   :  { %205 = vmatpush.msra.mxu3 %v123_v12  ;;  %145 = vmatpush.msra.mxu0 %v90_v13  ;;  %v85_v23 = vld [vmem:[#allocation2 + $0x98] sm:$0xff]  ;;  %v84_v25 = vld [vmem:[#allocation2 + $0x90] sm:$0xff]  ;;  %v118_v26 = vld [vmem:[#allocation2 + $0x1a0] sm:$0xff] }
  0x15   :  { %186 = vmatpush.msra.mxu2 %v89_v15  ;;  %165 = vmatpush.msra.mxu1 %v122_v18  ;;  %v117_v24 = vld [vmem:[#allocation2 + $0x198] sm:$0xff]  ;;  %v83_v27 = vld [vmem:[#allocation2 + $0x88] sm:$0xff]  ;;  %v82_v29 = vld [vmem:[#allocation2 + $0x80] sm:$0xff] }
  0x16   :  { %206 = vmatpush.msra.mxu3 %v121_v16  ;;  %146 = vmatpush.msra.mxu0 %v88_v17  ;;  %v115_v28 = vld [vmem:[#allocation2 + $0x188] sm:$0xff]  ;;  %v116_v30 = vld [vmem:[#allocation2 + $0x190] sm:$0xff]  ;;  %v81_v31 = vld [vmem:[#allocation2 + $0x78] sm:$0xff] }
  0x17   :  { %187 = vmatpush.msra.mxu2 %v87_v19  ;;  %166 = vmatpush.msra.mxu1 %v120_v22  ;;  %v113_v32 = vld [vmem:[#allocation2 + $0x178] sm:$0xff]  ;;  %v80_v33 = vld [vmem:[#allocation2 + $0x70] sm:$0xff]  ;;  %v114_v34 = vld [vmem:[#allocation2 + $0x180] sm:$0xff] }
  0x18   :  { %207 = vmatpush.msra.mxu3 %v119_v20  ;;  %147 = vmatpush.msra.mxu0 %v86_v21  ;;  %v79_v35 = vld [vmem:[#allocation2 + $0x68] sm:$0xff]  ;;  %v78_v37 = vld [vmem:[#allocation2 + $0x60] sm:$0xff]  ;;  %v112_v38 = vld [vmem:[#allocation2 + $0x170] sm:$0xff] }
  0x19   :  { %188 = vmatpush.msra.mxu2 %v85_v23  ;;  %167 = vmatpush.msra.mxu1 %v118_v26  ;;  %v111_v36 = vld [vmem:[#allocation2 + $0x168] sm:$0xff]  ;;  %v77_v39 = vld [vmem:[#allocation2 + $0x58] sm:$0xff]  ;;  %v76_v41 = vld [vmem:[#allocation2 + $0x50] sm:$0xff] }
  0x1a   :  { %208 = vmatpush.msra.mxu3 %v117_v24  ;;  %148 = vmatpush.msra.mxu0 %v84_v25  ;;  %v109_v40 = vld [vmem:[#allocation2 + $0x158] sm:$0xff]  ;;  %v110_v42 = vld [vmem:[#allocation2 + $0x160] sm:$0xff]  ;;  %v75_v44 = vld [vmem:[#allocation2 + $0x48] sm:$0xff] }
  0x1b   :  { %189 = vmatpush.msra.mxu2 %v83_v27  ;;  %168 = vmatpush.msra.mxu1 %v116_v30  ;;  %v65_v43 = vld [vmem:[%s624_s0] sm:$0xf]  ;;  %v107_v45 = vld [vmem:[#allocation2 + $0x148] sm:$0xff]  ;;  %v74_v46 = vld [vmem:[#allocation2 + $0x40] sm:$0xff] }
  0x1c   :  { %209 = vmatpush.msra.mxu3 %v115_v28  ;;  %149 = vmatpush.msra.mxu0 %v82_v29  ;;  %137 = vst [vmem:[#allocation1] ss:$4 sm:$0xff] %v65_v43  ;;  %v108_v47 = vld [vmem:[#allocation2 + $0x150] sm:$0xff]  ;;  %v73_v48 = vld [vmem:[#allocation2 + $0x38] sm:$0xff]  ;;  %v106_v51 = vld [vmem:[#allocation2 + $0x140] sm:$0xff] }
  0x1d   :  { %190 = vmatpush.msra.mxu2 %v81_v31  ;;  %169 = vmatpush.msra.mxu1 %v114_v34  ;;  %v105_v49 = vld [vmem:[#allocation2 + $0x138] sm:$0xff]  ;;  %v72_v50 = vld [vmem:[#allocation2 + $0x30] sm:$0xff]  ;;  %v71_v52 = vld [vmem:[#allocation2 + $0x28] sm:$0xff] }
  0x1e   :  { %210 = vmatpush.msra.mxu3 %v113_v32  ;;  %150 = vmatpush.msra.mxu0 %v80_v33  ;;  %v103_v53 = vld [vmem:[#allocation2 + $0x128] sm:$0xff]  ;;  %v70_v54 = vld [vmem:[#allocation2 + $0x20] sm:$0xff]  ;;  %v104_v55 = vld [vmem:[#allocation2 + $0x130] sm:$0xff] }
  0x1f   :  { %191 = vmatpush.msra.mxu2 %v79_v35  ;;  %170 = vmatpush.msra.mxu1 %v112_v38  ;;  %v69_v56 = vld [vmem:[#allocation2 + $0x18] sm:$0xff]  ;;  %v68_v58 = vld [vmem:[#allocation2 + $0x10] sm:$0xff]  ;;  %v102_v59 = vld [vmem:[#allocation2 + $0x120] sm:$0xff] }
  0x20   :  { %211 = vmatpush.msra.mxu3 %v111_v36  ;;  %151 = vmatpush.msra.mxu0 %v78_v37  ;;  %v101_v57 = vld [vmem:[#allocation2 + $0x118] sm:$0xff]  ;;  %v67_v60 = vld [vmem:[#allocation2 + $0x8] sm:$0xff]  ;;  %v66_v0 = vld [vmem:[#allocation2] sm:$0xff] }
  0x21   :  { %192 = vmatpush.msra.mxu2 %v77_v39  ;;  %171 = vmatpush.msra.mxu1 %v110_v42  ;;  %v99_v61 = vld [vmem:[#allocation2 + $0x108] sm:$0xff]  ;;  %v100_v1 = vld [vmem:[#allocation2 + $0x110] sm:$0xff]  ;;  %v98_v2 = vld [vmem:[#allocation2 + $0x100] sm:$0xff] }
  0x22   :  { %212 = vmatpush.msra.mxu3 %v109_v40  ;;  %152 = vmatpush.msra.mxu0 %v76_v41  ;;  %v239_v3 = vld [vmem:[#allocation5 + $0x78] sm:$0xff]  ;;  %v238_v4 = vld [vmem:[#allocation5 + $0x70] sm:$0xff]  ;;  %v237_v6 = vld [vmem:[#allocation5 + $0x68] sm:$0xff] }
  0x23   :  { %193 = vmatpush.msra.mxu2 %v75_v44  ;;  %172 = vmatpush.msra.mxu1 %v108_v47  ;;  %v138_v62 = vld.sshfl [vmem:[#allocation1] sm:$0xff pattern:$0x73625140]  ;;  %v139_v63 = vld.sshfl [vmem:[#allocation1 + $0x8] sm:$0xff pattern:$0x73625140] }
  0x24   :  { %213 = vmatpush.msra.mxu3 %v107_v45  ;;  %153 = vmatpush.msra.mxu0 %v74_v46  ;;  %v255_v5 = vld [vmem:[#allocation5 + $0xf8] sm:$0xff]  ;;  %v254_v7 = vld [vmem:[#allocation5 + $0xf0] sm:$0xff]  ;;  %v236_v8 = vld [vmem:[#allocation5 + $0x60] sm:$0xff] }
  0x25   :  { %194 = vmatpush.msra.mxu2 %v73_v48  ;;  %173 = vmatpush.msra.mxu1 %v106_v51  ;;  %v253_v9 = vld [vmem:[#allocation5 + $0xe8] sm:$0xff]  ;;  %v235_v10 = vld [vmem:[#allocation5 + $0x58] sm:$0xff]  ;;  %v252_v11 = vld [vmem:[#allocation5 + $0xe0] sm:$0xff] }
  0x26   :  { %214 = vmatpush.msra.mxu3 %v105_v49  ;;  %154 = vmatpush.msra.mxu0 %v72_v50  ;;  %v234_v12 = vld [vmem:[#allocation5 + $0x50] sm:$0xff]  ;;  %v251_v13 = vld [vmem:[#allocation5 + $0xd8] sm:$0xff]  ;;  %v233_v14 = vld [vmem:[#allocation5 + $0x48] sm:$0xff] }
  0x27   :  { %195 = vmatpush.msra.mxu2 %v71_v52  ;;  %174 = vmatpush.msra.mxu1 %v104_v55  ;;  %v250_v15 = vld [vmem:[#allocation5 + $0xd0] sm:$0xff]  ;;  %v232_v16 = vld [vmem:[#allocation5 + $0x40] sm:$0xff]  ;;  %v249_v17 = vld [vmem:[#allocation5 + $0xc8] sm:$0xff] }
  0x28   :  { %215 = vmatpush.msra.mxu3 %v103_v53  ;;  %155 = vmatpush.msra.mxu0 %v70_v54  ;;  %v231_v18 = vld [vmem:[#allocation5 + $0x38] sm:$0xff]  ;;  %v248_v19 = vld [vmem:[#allocation5 + $0xc0] sm:$0xff]  ;;  %v230_v20 = vld [vmem:[#allocation5 + $0x30] sm:$0xff] }
  0x29   :  { %196 = vmatpush.msra.mxu2 %v69_v56  ;;  %175 = vmatpush.msra.mxu1 %v102_v59  ;;  %v247_v21 = vld [vmem:[#allocation5 + $0xb8] sm:$0xff]  ;;  %v229_v22 = vld [vmem:[#allocation5 + $0x28] sm:$0xff]  ;;  %v246_v23 = vld [vmem:[#allocation5 + $0xb0] sm:$0xff] }
  0x2a   :  { %216 = vmatpush.msra.mxu3 %v101_v57  ;;  %156 = vmatpush.msra.mxu0 %v68_v58  ;;  %v228_v24 = vld [vmem:[#allocation5 + $0x20] sm:$0xff]  ;;  %v245_v25 = vld [vmem:[#allocation5 + $0xa8] sm:$0xff]  ;;  %v227_v26 = vld [vmem:[#allocation5 + $0x18] sm:$0xff] }
  0x2b   :  { %197 = vmatpush.msra.mxu2 %v67_v60  ;;  %176 = vmatpush.msra.mxu1 %v100_v1  ;;  %v244_v27 = vld [vmem:[#allocation5 + $0xa0] sm:$0xff]  ;;  %v226_v28 = vld [vmem:[#allocation5 + $0x10] sm:$0xff]  ;;  %v243_v29 = vld [vmem:[#allocation5 + $0x98] sm:$0xff] }
  0x2c   :  { %217 = vmatpush.msra.mxu3 %v99_v61  ;;  %198 = vmatmul.f32.vlgmr.msra.gmra.mxu2 %v138_v62  ;;  %v225_v30 = vld [vmem:[#allocation5 + $0x8] sm:$0xff]  ;;  %v242_v31 = vld [vmem:[#allocation5 + $0x90] sm:$0xff]  ;;  %v224_v32 = vld [vmem:[#allocation5] sm:$0xff] }
  0x2d   :  { %218 = vmatmul.f32.vlgmr.msra.gmra.mxu3 %v139_v63  ;;  %157 = vmatpush.msra.mxu0 %v66_v0  ;;  %v241_v33 = vld [vmem:[#allocation5 + $0x88] sm:$0xff]  ;;  %v240_v34 = vld [vmem:[#allocation5 + $0x80] sm:$0xff]  ;;  %v316_v35 = vld [vmem:[%s629_s5 + $0x78] sm:$0xff] }
  0x2e   :  { %158 = vmatmul.f32.vlgmr.msra.gmra.mxu0 %v138_v62  ;;  %177 = vmatpush.msra.mxu1 %v98_v2  ;;  %v315_v36 = vld [vmem:[%s629_s5 + $0x70] sm:$0xff]  ;;  %v314_v37 = vld [vmem:[%s629_s5 + $0x68] sm:$0xff]  ;;  %v313_v38 = vld [vmem:[%s629_s5 + $0x60] sm:$0xff] }
  0x2f   :  { %260 = vmatpush.msrb.mxu0 %v239_v3  ;;  %178 = vmatmul.f32.vlgmr.msra.gmra.mxu1 %v139_v63  ;;  %v312_v39 = vld [vmem:[%s629_s5 + $0x58] sm:$0xff]  ;;  %v311_v40 = vld [vmem:[%s629_s5 + $0x50] sm:$0xff]  ;;  %v310_v41 = vld [vmem:[%s629_s5 + $0x48] sm:$0xff] }
  0x30   :  { %280 = vmatpush.msrb.mxu1 %v255_v5  ;;  %321 = vmatpush.msrb.mxu2 %v316_v35  ;;  %v309_v42 = vld [vmem:[%s629_s5 + $0x40] sm:$0xff]  ;;  %v308_v43 = vld [vmem:[%s629_s5 + $0x38] sm:$0xff]  ;;  %v307_v45 = vld [vmem:[%s629_s5 + $0x30] sm:$0xff] }
  0x31   :  { %261 = vmatpush.msrb.mxu0 %v238_v4  ;;  %v130_v44 = vld [vmem:[%s626_s2] sm:$0x3]  ;;  %v306_v47 = vld [vmem:[%s629_s5 + $0x28] sm:$0xff]  ;;  %v304_v60 = vld [vmem:[%s629_s5 + $0x18] sm:$0xff] }
  0x32   :  { %281 = vmatpush.msrb.mxu1 %v254_v7  ;;  %322 = vmatpush.msrb.mxu2 %v315_v36  ;;  %v132_v46 = vperm.slane %v130_v44, 0  ;;  %v305_v48 = vld [vmem:[%s629_s5 + $0x20] sm:$0xff]  ;;  %v133_v51 = vperm.slane %v130_v44, 1  ;;  %v303_v61 = vld [vmem:[%s629_s5 + $0x10] sm:$0xff]  ;;  %v302_v62 = vld [vmem:[%s629_s5 + $0x8] sm:$0xff] }
  0x33   :  { %262 = vmatpush.msrb.mxu0 %v237_v6  ;;  %v301_v63 = vld [vmem:[%s629_s5] sm:$0xff]  ;;  %v345_v0 = vld [vmem:[%s631_s7 + $0x18] sm:$0xff]  ;;  %v344_v1 = vld [vmem:[%s631_s7 + $0x10] sm:$0xff] }
  0x34   :  { %282 = vmatpush.msrb.mxu1 %v253_v9  ;;  %323 = vmatpush.msrb.mxu2 %v314_v37  ;;  %v402_v2 = vld [vmem:[%s628_s4] ss:$0 sm:$0xff] }
  0x35   :  { %263 = vmatpush.msrb.mxu0 %v236_v8  ;;  %366 = vmatpush.msrb.mxu3 %v345_v0  ;;  %v343_v8 = vld [vmem:[%s631_s7 + $0x8] sm:$0xff]  ;;  %v342_v9 = vld [vmem:[%s631_s7] sm:$0xff]  ;;  %s383_s7 = sshll.u32 %s633_s9, 4  ;;  %s384_s7 = int_to_ptr.hbm [resolvable:$true] %s383_s7 }
  0x36   :  { %283 = vmatpush.msrb.mxu1 %v252_v11  ;;  %324 = vmatpush.msrb.mxu2 %v313_v38 }
  0x37   :  { %264 = vmatpush.msrb.mxu0 %v235_v10  ;;  %367 = vmatpush.msrb.mxu3 %v344_v1  ;;  %v403_v10 = vld [vmem:[%s630_s6] ss:$0 sm:$0xff] }
  0x38   :  { %284 = vmatpush.msrb.mxu1 %v251_v13  ;;  %325 = vmatpush.msrb.mxu2 %v312_v39 }
  0x39   :  { %265 = vmatpush.msrb.mxu0 %v234_v12  ;;  %368 = vmatpush.msrb.mxu3 %v343_v8 }
  0x3a   :  { %285 = vmatpush.msrb.mxu1 %v250_v15  ;;  %326 = vmatpush.msrb.mxu2 %v311_v40 }
  0x3b   :  { %266 = vmatpush.msrb.mxu0 %v233_v14  ;;  %369 = vmatpush.msrb.mxu3 %v342_v9  ;;  %v404_v14 = vld [vmem:[%s632_s8] ss:$0 sm:$0xff] }
  0x3c   :  { %286 = vmatpush.msrb.mxu1 %v249_v17  ;;  %327 = vmatpush.msrb.mxu2 %v310_v41 }
  0x3d   :  { %267 = vmatpush.msrb.mxu0 %v232_v16 }
  0x3e   :  { %287 = vmatpush.msrb.mxu1 %v248_v19  ;;  %328 = vmatpush.msrb.mxu2 %v309_v42 }
  0x3f   :  { %268 = vmatpush.msrb.mxu0 %v231_v18 }
  0x40   :  { %288 = vmatpush.msrb.mxu1 %v247_v21  ;;  %329 = vmatpush.msrb.mxu2 %v308_v43 }
  0x41   :  { %269 = vmatpush.msrb.mxu0 %v230_v20 }
  0x42   :  { %289 = vmatpush.msrb.mxu1 %v246_v23  ;;  %330 = vmatpush.msrb.mxu2 %v307_v45 }
  0x43   :  { %270 = vmatpush.msrb.mxu0 %v229_v22 }
  0x44   :  { %290 = vmatpush.msrb.mxu1 %v245_v25  ;;  %331 = vmatpush.msrb.mxu2 %v306_v47 }
  0x45   :  { %271 = vmatpush.msrb.mxu0 %v228_v24 }
  0x46   :  { %291 = vmatpush.msrb.mxu1 %v244_v27  ;;  %332 = vmatpush.msrb.mxu2 %v305_v48 }
  0x47   :  { %272 = vmatpush.msrb.mxu0 %v227_v26 }
  0x48   :  { %292 = vmatpush.msrb.mxu1 %v243_v29  ;;  %333 = vmatpush.msrb.mxu2 %v304_v60 }
  0x49   :  { %273 = vmatpush.msrb.mxu0 %v226_v28 }
  0x4a   :  { %293 = vmatpush.msrb.mxu1 %v242_v31  ;;  %334 = vmatpush.msrb.mxu2 %v303_v61 }
  0x4b   :  { %274 = vmatpush.msrb.mxu0 %v225_v30 }
  0x4c   :  { %294 = vmatpush.msrb.mxu1 %v241_v33  ;;  %335 = vmatpush.msrb.mxu2 %v302_v62 }
  0x4d   :  { %275 = vmatpush.msrb.mxu0 %v224_v32 }
  0x4e   :  { %295 = vmatpush.msrb.mxu1 %v240_v34  ;;  %336 = vmatpush.msrb.mxu2 %v301_v63 }
  0xab   :  { %v159_v49 = vpop.f32.mrf.mxu0 }
  0xac   :  { %v160_v50 = vadd.f32 %v159_v49, %v132_v46  ;;  %v179_v52 = vpop.f32.mrf.mxu1 }
  0xae   :  { %v180_v53 = vadd.f32 %v179_v52, %v160_v50 }
  0xaf   :  { %v199_v54 = vpop.f32.mrf.mxu2 }
  0xb0   :  { %v219_v55 = vpop.f32.mrf.mxu3  ;;  %v222_v56 = vmax.f32 %v180_v53, 0.0  ;;  %v200_v57 = vadd.f32 %v199_v54, %v133_v51 }
  0xb2   :  { %v220_v58 = vadd.f32 %v219_v55, %v200_v57  ;;  %276 = vmatmul.f32.vlgmr.msrb.gmra.mxu0 %v222_v56 }
  0xb4   :  { %v223_v59 = vmax.f32 %v220_v58, 0.0 }
  0xb6   :  { %296 = vmatmul.f32.vlgmr.msrb.gmra.mxu1 %v223_v59 }
 0x12f   :  { %v277_v3 = vpop.f32.mrf.mxu0 }
 0x130   :  { %v278_v4 = vadd.f32 %v402_v2, %v277_v3 }
 0x133   :  { %v297_v5 = vpop.f32.mrf.mxu1 }
 0x134   :  { %v298_v6 = vadd.f32 %v297_v5, %v278_v4 }
 0x136   :  { %v300_v7 = vmax.f32 %v298_v6, 0.0 }
 0x138   :  { %337 = vmatmul.f32.vlgmr.msrb.gmra.mxu2 %v300_v7 }
 0x1bb   :  { %v338_v11 = vpop.f32.mrf.mxu2 }
 0x1bc   :  { %v339_v12 = vadd.f32 %v403_v10, %v338_v11 }
 0x1be   :  { %v341_v13 = vmax.f32 %v339_v12, 0.0 }
 0x1c0   :  { %394 = vmatmul.msk.f32.vlgmr.msrb.gmra.mxu3 %vm350_vm0, %v341_v13 }
 0x243   :  { %v371_v15 = vpop.f32.mrf.mxu3 }
 0x244   :  { %v372_v16 = vadd.f32 %v404_v14, %v371_v15 }
 0x246   :  { %375 = vst.msk [vmem:[#allocation7] sm:$0x3] %vm374_vm1, %v372_v16 }
 0x247   :  { %386 = dma.vmem_to_hbm [thread:$0]  %s382_s1, 32, %s384_s7, [#allocation4]  }
 0x248   :  { %481 = dma.done.wait [#allocation4], 32  }
 0x249   :  { %482 = vsyncadd [#allocation4], 4294967264 }
 0x24a   :  { %391 = vsyncpa [#allocation3], 1 }
 0x24b   :  { %392 = vsyncpa [#allocation6], 1 }
 0x24c   :  { %393 = vsyncpa [#allocation4], 1 }

</bundles_post_ra>
